<compile_context>
chip_gen: v6e
topology: v6e:2x2x1
jax: 0.10.0
libtpu: 0.0.40
codegen_flags: <defaults>
</compile_context>

<pallas_src>
import jax
import jax.numpy as jnp
from jax.experimental import pallas as pl
from jax.experimental.pallas import tpu as pltpu


_STEP_OVERHEAD_BYTES = 400_000  # ~0.35 us of HBM bandwidth; penalizes tiny steps


def _vmem_capacity_bytes():
    try:
        cap = getattr(pltpu.get_tpu_info(), "vmem_capacity_bytes", None)
        if cap:
            return int(cap)
    except Exception:
        pass
    return 64 * 1024 * 1024  # conservative: v7x per-TensorCore VMEM


def _pick_gn(n):
    # n-slots per grid step.  Block-shape rule: the second-to-last block dim
    # must equal the full dim (N) or be a multiple of 8.
    if n <= 16:
        return n
    for g in (16, 8):
        if n % g == 0:
            return g
    # TODO(synk): large N with no multiple-of-8 divisor falls back to a
    # whole-N block (heavy unroll); consider padding N to a multiple of 8.
    return n


def _divisors(n, cap):
    return [d for d in range(1, min(n, cap) + 1) if n % d == 0]


def _step_bytes(tb, gn, tn, tk, itemsizes, with_bias):
    x_it, w_it, b_it, o_it = itemsizes
    per_block = (tb * gn * tk * x_it
                 + gn * tk * tn * w_it
                 + (gn * tn * b_it if with_bias else 0)
                 + tb * gn * tn * o_it)
    # double-buffered blocks + one f32 accumulator / dot intermediate
    return 2 * per_block + tb * gn * tn * 4


def _choose_tiles(B, N, gn, In, Out_p, itemsizes, with_bias, budget, k_tile):
    x_it, w_it, _, o_it = itemsizes

    tb_cands = sorted(_divisors(B, 1024), reverse=True)
    tn_cands = sorted([t for t in _divisors(Out_p, 1024)
                       if t == Out_p or t % 128 == 0], reverse=True)
    if not tn_cands:
        tn_cands = [Out_p]

    if k_tile is not None:
        assert In % k_tile == 0 and (k_tile == In or k_tile % 128 == 0), (
            "k_tile must divide In and be a multiple of 128 (or equal In)")
        tk_cands = [k_tile]
    else:
        tk_cands = [In] + sorted([t for t in _divisors(In, 1024)
                                  if t % 128 == 0 and t != In], reverse=True)

    x_bytes = B * N * In * x_it
    w_bytes = N * In * Out_p * w_it
    o_bytes = B * N * Out_p * o_it

    best = None
    for tk in tk_cands:
        for tn in tn_cands:
            for tb in tb_cands:
                if _step_bytes(tb, gn, tn, tk, itemsizes, with_bias) > budget:
                    continue
                n_i, n_g = B // tb, N // gn
                n_j, n_k = Out_p // tn, In // tk
                steps = n_i * n_g * n_j * n_k
                if n_k == 1:
                    # one operand stays resident across the innermost axis
                    extra = min((n_i - 1) * w_bytes, (n_j - 1) * x_bytes)
                else:
                    extra = (n_i - 1) * w_bytes + (n_j - 1) * x_bytes
                cost = (x_bytes + w_bytes + o_bytes + extra
                        + steps * _STEP_OVERHEAD_BYTES)
                if best is None or cost < best[0]:
                    best = (cost, tb, tn, tk)
    if best is None:
        # Nothing fits the budget; fall back to the smallest tiles.
        # TODO(synk): also split the gn (n-slot) axis for extreme N*In*Out.
        return min(tb_cands), min(tn_cands), min(tk_cands)
    return best[1], best[2], best[3]


def _make_kernel(gn, with_bias):
    # x_ref: (tb, gn, In); w_ref: (gn, In, tn); b_ref: (gn, tn); o_ref: (tb, gn, tn)
    if with_bias:
        def kernel(x_ref, w_ref, b_ref, o_ref):
            for g in range(gn):
                y = jnp.dot(x_ref[:, g, :], w_ref[g],
                            preferred_element_type=jnp.float32)
                y = y + b_ref[pl.ds(g, 1), :].astype(jnp.float32)
                o_ref[:, g, :] = y.astype(o_ref.dtype)
    else:
        def kernel(x_ref, w_ref, o_ref):
            for g in range(gn):
                y = jnp.dot(x_ref[:, g, :], w_ref[g],
                            preferred_element_type=jnp.float32)
                o_ref[:, g, :] = y.astype(o_ref.dtype)
    return kernel


def _make_ksplit_kernel(gn, with_bias):
    K_AXIS = 3

    def body(x_ref, w_ref, b_ref, o_ref, acc_ref):
        k = pl.program_id(K_AXIS)

        @pl.when(k == 0)
        def _():
            acc_ref[...] = jnp.zeros_like(acc_ref)

        for g in range(gn):
            acc_ref[:, g, :] += jnp.dot(x_ref[:, g, :], w_ref[g],
                                        preferred_element_type=jnp.float32)

        @pl.when(k == pl.num_programs(K_AXIS) - 1)
        def _():
            y = acc_ref[...]
            if b_ref is not None:
                y = y + b_ref[...].astype(jnp.float32)[None, :, :]
            o_ref[...] = y.astype(o_ref.dtype)

    if with_bias:
        def kernel(x_ref, w_ref, b_ref, o_ref, acc_ref):
            body(x_ref, w_ref, b_ref, o_ref, acc_ref)
    else:
        def kernel(x_ref, w_ref, o_ref, acc_ref):
            body(x_ref, w_ref, None, o_ref, acc_ref)
    return kernel


def nlinear(x, weight, bias=None, *, k_tile=None):
    """NLinear forward. x: (B, N, In); weight: (N, In, Out); bias: (N, Out)|None."""
    B, N, In = x.shape
    Nw, In_w, Out = weight.shape
    assert (Nw, In_w) == (N, In), "weight shape must be (N, In, Out)"
    assert x.dtype == weight.dtype, (
        "x and weight dtypes must match (mixed dtypes silently promote and "
        "miss the fast MXU path); cast both to bf16 for peak throughput")
    out_dtype = x.dtype
    with_bias = bias is not None

    # Lane-dense output tiles: pad Out up to a multiple of 128 when it is
    # large but misaligned (avoids masked partial stores).  For Out <= 128 the
    # full-dim tile is kept (padding + the post-slice copy would cost more
    # HBM traffic than the masked stores).
    out_pad = 0 if Out <= 128 else (-Out) % 128
    Out_p = Out + out_pad
    if out_pad:
        weight = jnp.pad(weight, ((0, 0), (0, 0), (0, out_pad)))
        if with_bias:
            bias = jnp.pad(bias, ((0, 0), (0, out_pad)))

    gn = _pick_gn(N)

    vmem_cap = _vmem_capacity_bytes()
    budget = int(0.70 * vmem_cap)          # tile-selection budget (headroom)
    itemsizes = (x.dtype.itemsize, weight.dtype.itemsize,
                 bias.dtype.itemsize if with_bias else 0,
                 jnp.dtype(out_dtype).itemsize)
    tb, tn, tk = _choose_tiles(B, N, gn, In, Out_p, itemsizes, with_bias,
                               budget, k_tile)
    n_i, n_g, n_j, n_k = B // tb, N // gn, Out_p // tn, In // tk

    x_bytes = B * N * In * itemsizes[0]
    w_bytes = N * In * Out_p * itemsizes[1]
    b_bytes = N * Out_p * itemsizes[2] if with_bias else 0
    o_bytes = B * N * Out_p * itemsizes[3]
    cost = pl.CostEstimate(flops=2 * B * N * In * Out_p, transcendentals=0,
                           bytes_accessed=x_bytes + w_bytes + b_bytes + o_bytes)

    needed = _step_bytes(tb, gn, tn, tk, itemsizes, with_bias)
    vmem_limit = int(min(0.85 * vmem_cap, max(32 * 1024 * 1024, 2 * needed)))

    if n_k == 1:
        kernel = _make_kernel(gn, with_bias)
        if (n_i - 1) * w_bytes <= (n_j - 1) * x_bytes:
            # j innermost: x block resident across Out tiles, weight re-read
            # once per batch tile.
            grid = (n_i, n_g, n_j)
            x_map = lambda i, g, j: (i, g, 0)
            w_map = lambda i, g, j: (g, 0, j)
            b_map = lambda i, g, j: (g, j)
            o_map = lambda i, g, j: (i, g, j)
        else:
            # i innermost: weight block resident across batch tiles, x re-read
            # once per Out tile.
            grid = (n_g, n_j, n_i)
            x_map = lambda g, j, i: (i, g, 0)
            w_map = lambda g, j, i: (g, 0, j)
            b_map = lambda g, j, i: (g, j)
            o_map = lambda g, j, i: (i, g, j)
        dims = ("parallel", "parallel", "parallel")
        scratch = []
        x_block, w_block = (tb, gn, In), (gn, In, tn)
    else:
        # In-reduction split: f32 accumulator in VMEM, reduction axis innermost.
        kernel = _make_ksplit_kernel(gn, with_bias)
        grid = (n_i, n_g, n_j, n_k)
        x_map = lambda i, g, j, k: (i, g, k)
        w_map = lambda i, g, j, k: (g, k, j)
        b_map = lambda i, g, j, k: (g, j)
        o_map = lambda i, g, j, k: (i, g, j)
        dims = ("parallel", "parallel", "parallel", "arbitrary")
        scratch = [pltpu.VMEM((tb, gn, tn), jnp.float32)]
        x_block, w_block = (tb, gn, tk), (gn, tk, tn)

    in_specs = [pl.BlockSpec(x_block, x_map), pl.BlockSpec(w_block, w_map)]
    inputs = [x, weight]
    if with_bias:
        in_specs.append(pl.BlockSpec((gn, tn), b_map))
        inputs.append(bias)

    out = pl.pallas_call(
        kernel,
        out_shape=jax.ShapeDtypeStruct((B, N, Out_p), out_dtype),
        grid_spec=pltpu.PrefetchScalarGridSpec(
            num_scalar_prefetch=0,
            grid=grid,
            in_specs=in_specs,
            out_specs=pl.BlockSpec((tb, gn, tn), o_map),
            scratch_shapes=scratch,
        ),
        compiler_params=pltpu.CompilerParams(
            dimension_semantics=dims,
            vmem_limit_bytes=vmem_limit,
        ),
        cost_estimate=cost,
    )(*inputs)

    if out_pad:
        out = out[..., :Out]
    return out


def init_params(key, n, in_features, out_features, *, bias=True):
    """Matches NLinear.reset_parameters: U(-1/sqrt(In), 1/sqrt(In))."""
    k_w, k_b = jax.random.split(key)
    d_rsqrt = in_features ** -0.5
    weight = jax.random.uniform(
        k_w, (n, in_features, out_features), jnp.float32, -d_rsqrt, d_rsqrt)
    b = (jax.random.uniform(k_b, (n, out_features), jnp.float32, -d_rsqrt, d_rsqrt)
         if bias else None)
    return weight, b


def reference(x, weight, bias):
    y = jnp.einsum("bni,nio->bno", x.astype(jnp.float32),
                   weight.astype(jnp.float32))
    if bias is not None:
        y = y + bias.astype(jnp.float32)
    return y


if __name__ == "__main__":
    key = jax.random.PRNGKey(0)
    k_x, k_p, k_x2, k_p2 = jax.random.split(key, 4)

    fn = jax.jit(nlinear, static_argnames=("k_tile",))

    # Case 1: bias, single-K path (whole In resident).
    B, N, IN, OUT = 16, 4, 64, 128
    x = jax.random.normal(k_x, (B, N, IN), jnp.float32)
    weight, bias = init_params(k_p, N, IN, OUT, bias=True)
    out = jax.block_until_ready(fn(x, weight, bias))
    ref = reference(x, weight, bias)
    assert out.shape == (B, N, OUT)
    assert jnp.allclose(out, ref, atol=1e-4, rtol=1e-4), "mismatch vs reference (bias)"

    # Case 2: no-bias static specialization.
    out_nb = jax.block_until_ready(fn(x, weight, None))
    ref_nb = reference(x, weight, None)
    assert jnp.allclose(out_nb, ref_nb, atol=1e-4, rtol=1e-4), "mismatch (no bias)"

    # Case 3: exercise the In-reduction (K-split) accumulator path.
    B2, N2, IN2, OUT2 = 16, 8, 256, 128
    x2 = jax.random.normal(k_x2, (B2, N2, IN2), jnp.float32)
    w2, b2 = init_params(k_p2, N2, IN2, OUT2, bias=True)
    out_ks = jax.block_until_ready(fn(x2, w2, b2, k_tile=128))
    ref_ks = reference(x2, w2, b2)
    assert out_ks.shape == (B2, N2, OUT2)
    assert jnp.allclose(out_ks, ref_ks, atol=5e-4, rtol=5e-4), "mismatch (k-split)"

    print("KERNEL_OK")
</pallas_src>

<mosaic_0001>
module attributes {stable_mosaic.version = 11 : i64} {
  func.func @kernel(%arg0: i32, %arg1: i32, %arg2: i32, %arg3: memref<16x4x64xf32, #tpu.memory_space<vmem>>, %arg4: memref<4x64x128xf32, #tpu.memory_space<vmem>>, %arg5: memref<4x128xf32, #tpu.memory_space<vmem>>, %arg6: memref<16x4x128xf32, #tpu.memory_space<vmem>>) attributes {dimension_semantics = [#tpu.dimension_semantics<parallel>, #tpu.dimension_semantics<parallel>, #tpu.dimension_semantics<parallel>], iteration_bounds = array<i64: 1, 1, 1>, scalar_prefetch = 0 : i64, scratch_operands = 0 : i64, tpu.core_type = #tpu.core_type<tc>, window_params = [{transform_indices = @transform_0, window_bounds = array<i64: 16, 4, 64>}, {transform_indices = @transform_1, window_bounds = array<i64: 4, 64, 128>}, {transform_indices = @transform_2, window_bounds = array<i64: 4, 128>}, {transform_indices = @transform_3, window_bounds = array<i64: 16, 4, 128>}]} {
    %c0 = arith.constant 0 : index
    %c0_0 = arith.constant 0 : index
    %c0_1 = arith.constant 0 : index
    %0 = vector.load %arg3[%c0, %c0_0, %c0_1] : memref<16x4x64xf32, #tpu.memory_space<vmem>>, vector<16x1x64xf32>
    %1 = vector.shape_cast %0 : vector<16x1x64xf32> to vector<16x64xf32>
    %c0_2 = arith.constant 0 : index
    %c0_3 = arith.constant 0 : index
    %c0_4 = arith.constant 0 : index
    %2 = vector.load %arg4[%c0_2, %c0_3, %c0_4] : memref<4x64x128xf32, #tpu.memory_space<vmem>>, vector<1x64x128xf32>
    %3 = vector.shape_cast %2 : vector<1x64x128xf32> to vector<64x128xf32>
    %cst = arith.constant dense<0.000000e+00> : vector<16x128xf32>
    %4 = tpu.matmul %1, %3, %cst {dimension_numbers = #tpu.dot_dimension_numbers<[1], [0], [0], [1], [0, 0, 1, 1], [], []>} : vector<16x64xf32>, vector<64x128xf32>, vector<16x128xf32> -> vector<16x128xf32>
    %c0_5 = arith.constant 0 : index
    %c0_6 = arith.constant 0 : index
    %5 = vector.load %arg5[%c0_5, %c0_6] : memref<4x128xf32, #tpu.memory_space<vmem>>, vector<1x128xf32>
    %6 = vector.broadcast %5 : vector<1x128xf32> to vector<16x128xf32>
    %7 = arith.addf %4, %6 : vector<16x128xf32>
    %c0_7 = arith.constant 0 : index
    %c0_8 = arith.constant 0 : index
    %c0_9 = arith.constant 0 : index
    %8 = vector.load %arg6[%c0_7, %c0_8, %c0_9] : memref<16x4x128xf32, #tpu.memory_space<vmem>>, vector<16x1x128xf32>
    %9 = vector.shape_cast %8 : vector<16x1x128xf32> to vector<16x128xf32>
    %10 = vector.shape_cast %7 : vector<16x128xf32> to vector<16x1x128xf32>
    tpu.vector_store %arg6[%c0_7, %c0_8, %c0_9], %10 {strides = array<i32>} : memref<16x4x128xf32, #tpu.memory_space<vmem>>, vector<16x1x128xf32>,
    %c0_10 = arith.constant 0 : index
    %c1 = arith.constant 1 : index
    %c0_11 = arith.constant 0 : index
    %11 = vector.load %arg3[%c0_10, %c1, %c0_11] : memref<16x4x64xf32, #tpu.memory_space<vmem>>, vector<16x1x64xf32>
    %12 = vector.shape_cast %11 : vector<16x1x64xf32> to vector<16x64xf32>
    %c1_12 = arith.constant 1 : index
    %c0_13 = arith.constant 0 : index
    %c0_14 = arith.constant 0 : index
    %13 = vector.load %arg4[%c1_12, %c0_13, %c0_14] : memref<4x64x128xf32, #tpu.memory_space<vmem>>, vector<1x64x128xf32>
    %14 = vector.shape_cast %13 : vector<1x64x128xf32> to vector<64x128xf32>
    %cst_15 = arith.constant dense<0.000000e+00> : vector<16x128xf32>
    %15 = tpu.matmul %12, %14, %cst_15 {dimension_numbers = #tpu.dot_dimension_numbers<[1], [0], [0], [1], [0, 0, 1, 1], [], []>} : vector<16x64xf32>, vector<64x128xf32>, vector<16x128xf32> -> vector<16x128xf32>
    %c1_16 = arith.constant 1 : index
    %c0_17 = arith.constant 0 : index
    %16 = vector.load %arg5[%c1_16, %c0_17] : memref<4x128xf32, #tpu.memory_space<vmem>>, vector<1x128xf32>
    %17 = vector.broadcast %16 : vector<1x128xf32> to vector<16x128xf32>
    %18 = arith.addf %15, %17 : vector<16x128xf32>
    %c0_18 = arith.constant 0 : index
    %c1_19 = arith.constant 1 : index
    %c0_20 = arith.constant 0 : index
    %19 = vector.load %arg6[%c0_18, %c1_19, %c0_20] : memref<16x4x128xf32, #tpu.memory_space<vmem>>, vector<16x1x128xf32>
    %20 = vector.shape_cast %19 : vector<16x1x128xf32> to vector<16x128xf32>
    %21 = vector.shape_cast %18 : vector<16x128xf32> to vector<16x1x128xf32>
    tpu.vector_store %arg6[%c0_18, %c1_19, %c0_20], %21 {strides = array<i32>} : memref<16x4x128xf32, #tpu.memory_space<vmem>>, vector<16x1x128xf32>,
    %c0_21 = arith.constant 0 : index
    %c2 = arith.constant 2 : index
    %c0_22 = arith.constant 0 : index
    %22 = vector.load %arg3[%c0_21, %c2, %c0_22] : memref<16x4x64xf32, #tpu.memory_space<vmem>>, vector<16x1x64xf32>
    %23 = vector.shape_cast %22 : vector<16x1x64xf32> to vector<16x64xf32>
    %c2_23 = arith.constant 2 : index
    %c0_24 = arith.constant 0 : index
    %c0_25 = arith.constant 0 : index
    %24 = vector.load %arg4[%c2_23, %c0_24, %c0_25] : memref<4x64x128xf32, #tpu.memory_space<vmem>>, vector<1x64x128xf32>
    %25 = vector.shape_cast %24 : vector<1x64x128xf32> to vector<64x128xf32>
    %cst_26 = arith.constant dense<0.000000e+00> : vector<16x128xf32>
    %26 = tpu.matmul %23, %25, %cst_26 {dimension_numbers = #tpu.dot_dimension_numbers<[1], [0], [0], [1], [0, 0, 1, 1], [], []>} : vector<16x64xf32>, vector<64x128xf32>, vector<16x128xf32> -> vector<16x128xf32>
    %c2_27 = arith.constant 2 : index
    %c0_28 = arith.constant 0 : index
    %27 = vector.load %arg5[%c2_27, %c0_28] : memref<4x128xf32, #tpu.memory_space<vmem>>, vector<1x128xf32>
    %28 = vector.broadcast %27 : vector<1x128xf32> to vector<16x128xf32>
    %29 = arith.addf %26, %28 : vector<16x128xf32>
    %c0_29 = arith.constant 0 : index
    %c2_30 = arith.constant 2 : index
    %c0_31 = arith.constant 0 : index
    %30 = vector.load %arg6[%c0_29, %c2_30, %c0_31] : memref<16x4x128xf32, #tpu.memory_space<vmem>>, vector<16x1x128xf32>
    %31 = vector.shape_cast %30 : vector<16x1x128xf32> to vector<16x128xf32>
    %32 = vector.shape_cast %29 : vector<16x128xf32> to vector<16x1x128xf32>
    tpu.vector_store %arg6[%c0_29, %c2_30, %c0_31], %32 {strides = array<i32>} : memref<16x4x128xf32, #tpu.memory_space<vmem>>, vector<16x1x128xf32>,
    %c0_32 = arith.constant 0 : index
    %c3 = arith.constant 3 : index
    %c0_33 = arith.constant 0 : index
    %33 = vector.load %arg3[%c0_32, %c3, %c0_33] : memref<16x4x64xf32, #tpu.memory_space<vmem>>, vector<16x1x64xf32>
    %34 = vector.shape_cast %33 : vector<16x1x64xf32> to vector<16x64xf32>
    %c3_34 = arith.constant 3 : index
    %c0_35 = arith.constant 0 : index
    %c0_36 = arith.constant 0 : index
    %35 = vector.load %arg4[%c3_34, %c0_35, %c0_36] : memref<4x64x128xf32, #tpu.memory_space<vmem>>, vector<1x64x128xf32>
    %36 = vector.shape_cast %35 : vector<1x64x128xf32> to vector<64x128xf32>
    %cst_37 = arith.constant dense<0.000000e+00> : vector<16x128xf32>
    %37 = tpu.matmul %34, %36, %cst_37 {dimension_numbers = #tpu.dot_dimension_numbers<[1], [0], [0], [1], [0, 0, 1, 1], [], []>} : vector<16x64xf32>, vector<64x128xf32>, vector<16x128xf32> -> vector<16x128xf32>
    %c3_38 = arith.constant 3 : index
    %c0_39 = arith.constant 0 : index
    %38 = vector.load %arg5[%c3_38, %c0_39] : memref<4x128xf32, #tpu.memory_space<vmem>>, vector<1x128xf32>
    %39 = vector.broadcast %38 : vector<1x128xf32> to vector<16x128xf32>
    %40 = arith.addf %37, %39 : vector<16x128xf32>
    %c0_40 = arith.constant 0 : index
    %c3_41 = arith.constant 3 : index
    %c0_42 = arith.constant 0 : index
    %41 = vector.load %arg6[%c0_40, %c3_41, %c0_42] : memref<16x4x128xf32, #tpu.memory_space<vmem>>, vector<16x1x128xf32>
    %42 = vector.shape_cast %41 : vector<16x1x128xf32> to vector<16x128xf32>
    %43 = vector.shape_cast %40 : vector<16x128xf32> to vector<16x1x128xf32>
    tpu.vector_store %arg6[%c0_40, %c3_41, %c0_42], %43 {strides = array<i32>} : memref<16x4x128xf32, #tpu.memory_space<vmem>>, vector<16x1x128xf32>,
    return
  }
  func.func @transform_0(%arg0: i32, %arg1: i32, %arg2: i32) -> (i32, i32, i32) {
    %c0_i32 = arith.constant 0 : i32
    %c0_i32_0 = arith.constant 0 : i32
    return %arg0, %arg1, %c0_i32 : i32, i32, i32
  }
  func.func @transform_1(%arg0: i32, %arg1: i32, %arg2: i32) -> (i32, i32, i32) {
    %c0_i32 = arith.constant 0 : i32
    %c0_i32_0 = arith.constant 0 : i32
    return %arg1, %c0_i32, %arg2 : i32, i32, i32
  }
  func.func @transform_2(%arg0: i32, %arg1: i32, %arg2: i32) -> (i32, i32) {
    %c0_i32 = arith.constant 0 : i32
    return %arg1, %arg2 : i32, i32
  }
  func.func @transform_3(%arg0: i32, %arg1: i32, %arg2: i32) -> (i32, i32, i32) {
    %c0_i32 = arith.constant 0 : i32
    return %arg0, %arg1, %arg2 : i32, i32, i32
  }
}

</mosaic_0001>

<bundles_post_ra>
// kernel: nlinear.1
= control target key start
LH: loop header
LB: loop body
LE: loop exit
PB: predicated region body
PF: predicated region fallthrough
CT: control target
= control target key end

     0   :  { %8 = vsyncpa [#allocation3], 0  ;;  %s1654_s0 = inlined_call_operand.hbm [shape: f32[16,4,64], index: 0, kind: input, shape index: {}]   ;;  %s1655_s1 = inlined_call_operand.hbm [shape: f32[4,64,128], index: 1, kind: input, shape index: {}]   ;;  %s1656_s2 = inlined_call_operand.hbm [shape: f32[4,128], index: 2, kind: input, shape index: {}]   ;;  %s1657_s3 = inlined_call_operand.hbm [shape: f32[16,4,128], index: 3, kind: output, shape index: {}]  }
   0x1   :  { %9 = vsyncpa [#allocation6], 0 }
   0x2   :  { %10 = vsyncpa [#allocation4], 0  ;;  %s1474_s12 = smov [#allocation5]  }
   0x3   :  { %s28_s13 = sshll.u32 %s1474_s12, 4  ;;  %s29_s13 = int_to_ptr.vmem [resolvable:$true] %s28_s13 }
   0x4   :  { %s1396_s14 = scalar_lea.vmem %s29_s13, 4096  ;;  %p1401_p1 = scmp.lt.s32.totalorder %s29_s13, %s29_s13 }
   0x5   :  { %p1397_p0 = scmp.ne.s32.totalorder %s29_s13, %s1396_s14  ;;  %p1402_p2 = scmp.lt.s32.totalorder %s1396_s14, %s1396_s14 }
   0x7   :  { %p1403_p3 = por %p1402_p2, %p1401_p1 }
   0x9   :  { %p1404_p4 = pnand %p1403_p3, %p1397_p0 }
   0xb   :  { %1407 = shalt.err (!%p1404_p4)
}
   0xc   :  { %s1475_s15 = smov 128   ;;  %s1476_s16 = smov 8  }
   0xd   :  { %34 = dma.hbm_to_vmem [thread:$0]  %s1655_s1, 4096, %s29_s13, [#allocation6], %s1475_s15, %s1475_s15, %s1476_s16  }
   0xe   :  { %s1477_s19 = smov [#allocation2]  }
   0xf   :  { %s16_s20 = sshll.u32 %s1477_s19, 4  ;;  %s17_s20 = int_to_ptr.vmem [resolvable:$true] %s16_s20 }
  0x10   :  { %s1416_s21 = scalar_lea.vmem %s17_s20, 1024  ;;  %p1421_p6 = scmp.lt.s32.totalorder %s17_s20, %s17_s20 }
  0x11   :  { %p1417_p5 = scmp.ne.s32.totalorder %s17_s20, %s1416_s21  ;;  %p1422_p7 = scmp.lt.s32.totalorder %s1416_s21, %s1416_s21 }
  0x13   :  { %p1423_p8 = por %p1422_p7, %p1421_p6 }
  0x15   :  { %p1424_p9 = pnand %p1423_p8, %p1417_p5 }
  0x17   :  { %1427 = shalt.err (!%p1424_p9)
}
  0x18   :  { %s1478_s22 = smov 64   ;;  %s1479_s23 = smov 4  }
  0x19   :  { %22 = dma.hbm_to_vmem [thread:$0]  %s1654_s0, 1024, %s17_s20, [#allocation3], %s1478_s22, %s1478_s22, %s1479_s23  }
  0x1a   :  { %s1480_s1 = smov [#allocation7]  }
  0x1b   :  { %s41_s26 = sshll.u32 %s1480_s1, 4  ;;  %s42_s26 = int_to_ptr.vmem [resolvable:$true] %s41_s26 }
  0x1c   :  { %s1436_s27 = scalar_lea.vmem %s42_s26, 64  ;;  %p1441_p11 = scmp.lt.s32.totalorder %s42_s26, %s42_s26 }
  0x1d   :  { %p1437_p10 = scmp.ne.s32.totalorder %s42_s26, %s1436_s27  ;;  %p1442_p12 = scmp.lt.s32.totalorder %s1436_s27, %s1436_s27 }
  0x1f   :  { %p1443_p13 = por %p1442_p12, %p1441_p11 }
  0x21   :  { %p1444_p0 = pnand %p1443_p13, %p1437_p10 }
  0x23   :  { %1447 = shalt.err (!%p1444_p0)
}
  0x24   :  { %44 = dma.hbm_to_vmem [thread:$0]  %s1656_s2, 64, %s42_s26, [#allocation6]  }
  0x25   :  { %1468 = dma.done.wait [#allocation3], 1024  }
  0x26   :  { %1469 = vsyncadd [#allocation3], 4294966272 }
  0x27   :  { %1470 = dma.done.wait [#allocation6], 4160  }
  0x28   :  { %1471 = vsyncadd [#allocation6], 4294963136  ;;  %v77_v0 = vld [vmem:[#allocation5 + $0x38] sm:$0xff]  ;;  %v76_v2 = vld [vmem:[#allocation5 + $0x30] sm:$0xff]  ;;  %vm100_vm0 = vcmask 1041409   ;;  %vm103_vm1 = vcmask 1042434  }
  0x29   :  { %v370_v1 = vld [vmem:[#allocation5 + $0x78] sm:$0xff]  ;;  %1303 = vmatprep.subr.mxu0 %v77_v0  ;;  %v369_v3 = vld [vmem:[#allocation5 + $0x70] sm:$0xff]  ;;  %v75_v4 = vld [vmem:[#allocation5 + $0x28] sm:$0xff]  ;;  %vm106_vm2 = vcmask 1043459   ;;  %vm109_vm3 = vcmask 1044484   ;;  %vm112_vm4 = vcmask 1045509  }
  0x2a   :  { %1322 = vmatprep.subr.mxu1 %v370_v1  ;;  %1304 = vmatpush3.msra.mxu0 %v77_v0  ;;  %v368_v5 = vld [vmem:[#allocation5 + $0x68] sm:$0xff]  ;;  %v74_v6 = vld [vmem:[#allocation5 + $0x20] sm:$0xff]  ;;  %v73_v8 = vld [vmem:[#allocation5 + $0x18] sm:$0xff]  ;;  %vm115_vm5 = vcmask 1046534   ;;  %vm118_vm6 = vcmask 1047559   ;;  %vm134_vm7 = vcmask 523264  }
  0x2b   :  { %1323 = vmatpush3.msra.mxu1 %v370_v1  ;;  %1305 = vmatprep.subr.mxu0 %v76_v2  ;;  %v367_v7 = vld [vmem:[#allocation5 + $0x60] sm:$0xff]  ;;  %v366_v9 = vld [vmem:[#allocation5 + $0x58] sm:$0xff]  ;;  %v72_v12 = vld [vmem:[#allocation5 + $0x10] sm:$0xff]  ;;  %s1482_s0 = smov [#allocation8]  }
  0x2c   :  { %1324 = vmatprep.subr.mxu1 %v369_v3  ;;  %1306 = vmatpush3.msra.mxu0 %v76_v2  ;;  %v54_v10 = vld [vmem:[#allocation2] sm:$0x1]  ;;  %v55_v11 = vld [vmem:[#allocation2 + $0x4] sm:$0x1]  ;;  %v56_v13 = vld [vmem:[#allocation2 + $0x8] sm:$0x1] }
  0x2d   :  { %1325 = vmatpush3.msra.mxu1 %v369_v3  ;;  %1307 = vmatprep.subr.mxu0 %v75_v4  ;;  %v57_v14 = vld [vmem:[#allocation2 + $0xc] sm:$0x1]  ;;  %v58_v15 = vld [vmem:[#allocation2 + $0x10] sm:$0x1]  ;;  %v59_v16 = vld [vmem:[#allocation2 + $0x14] sm:$0x1] }
  0x2e   :  { %1326 = vmatprep.subr.mxu1 %v368_v5  ;;  %1308 = vmatpush3.msra.mxu0 %v75_v4  ;;  %v60_v17 = vld [vmem:[#allocation2 + $0x18] sm:$0x1]  ;;  %v1515_v18 = vld [vmem:[#allocation2 + $0x1c] sm:$0x1]  ;;  %v365_v19 = vld [vmem:[#allocation5 + $0x50] sm:$0xff]  ;;  %v99_v22 = vrot.slane %v55_v11, 7 }
  0x2f   :  { %1327 = vmatpush3.msra.mxu1 %v368_v5  ;;  %1309 = vmatprep.subr.mxu0 %v74_v6  ;;  %v71_v20 = vld [vmem:[#allocation5 + $0x8] sm:$0xff]  ;;  %v102_v23 = vrot.slane %v56_v13, 6  ;;  %v105_v24 = vrot.slane %v57_v14, 5  ;;  %v108_v25 = vrot.slane %v58_v15, 4  ;;  %v111_v26 = vrot.slane %v59_v16, 3  ;;  %v70_v31 = vld [vmem:[#allocation5] sm:$0xff] }
  0x30   :  { %1328 = vmatprep.subr.mxu1 %v367_v7  ;;  %1310 = vmatpush3.msra.mxu0 %v74_v6  ;;  %v364_v21 = vld [vmem:[#allocation5 + $0x48] sm:$0xff]  ;;  %v114_v27 = vrot.slane %v60_v17, 2  ;;  %v117_v28 = vrot.slane %v1515_v18, 1  ;;  %v346_v29 = vld [vmem:[#allocation2 + $0x1] sm:$0x1]  ;;  %v101_v33 = vsel %vm100_vm0, %v99_v22, %v54_v10  ;;  %v1521_v46 = vld [vmem:[#allocation5 + $0xb8] sm:$0xff] }
  0x31   :  { %1329 = vmatpush3.msra.mxu1 %v367_v7  ;;  %1311 = vmatprep.subr.mxu0 %v73_v8  ;;  %v347_v30 = vld [vmem:[#allocation2 + $0x5] sm:$0x1]  ;;  %v348_v34 = vld [vmem:[#allocation2 + $0x9] sm:$0x1]  ;;  %v349_v35 = vld [vmem:[#allocation2 + $0xd] sm:$0x1]  ;;  %v104_v37 = vsel %vm103_vm1, %v102_v23, %v101_v33 }
  0x32   :  { %1330 = vmatprep.subr.mxu1 %v366_v9  ;;  %1312 = vmatpush3.msra.mxu0 %v73_v8  ;;  %v363_v32 = vld [vmem:[#allocation5 + $0x40] sm:$0xff]  ;;  %v350_v36 = vld [vmem:[#allocation2 + $0x11] sm:$0x1]  ;;  %v351_v38 = vld [vmem:[#allocation2 + $0x15] sm:$0x1]  ;;  %v107_v41 = vsel %vm106_vm2, %v105_v24, %v104_v37  ;;  %v392_v42 = vrot.slane %v347_v30, 7 }
  0x33   :  { %1331 = vmatpush3.msra.mxu1 %v366_v9  ;;  %1313 = vmatprep.subr.mxu0 %v72_v12  ;;  %v352_v39 = vld [vmem:[#allocation2 + $0x19] sm:$0x1]  ;;  %v353_v40 = vld [vmem:[#allocation2 + $0x1d] sm:$0x1]  ;;  %v394_v43 = vrot.slane %v348_v34, 6  ;;  %v396_v44 = vrot.slane %v349_v35, 5  ;;  %v110_v47 = vsel %vm109_vm3, %v108_v25, %v107_v41 }
  0x34   :  { %1332 = vmatprep.subr.mxu1 %v365_v19  ;;  %1314 = vmatpush3.msra.mxu0 %v72_v12  ;;  %v62_v45 = vld [vmem:[#allocation2 + $0x20] sm:$0x1]  ;;  %v398_v48 = vrot.slane %v350_v36, 4  ;;  %v400_v49 = vrot.slane %v351_v38, 3  ;;  %v402_v50 = vrot.slane %v352_v39, 2  ;;  %v1524_v52 = vld [vmem:[#allocation5 + $0xf8] sm:$0xff]  ;;  %v113_v53 = vsel %vm112_vm4, %v111_v26, %v110_v47 }
  0x35   :  { %1333 = vmatpush3.msra.mxu1 %v365_v19  ;;  %1315 = vmatprep.subr.mxu0 %v71_v20  ;;  %v63_v51 = vld [vmem:[#allocation2 + $0x24] sm:$0x1]  ;;  %v393_v54 = vsel %vm100_vm0, %v392_v42, %v346_v29  ;;  %v404_v55 = vrot.slane %v353_v40, 1  ;;  %v64_v56 = vld [vmem:[#allocation2 + $0x28] sm:$0x1]  ;;  %v116_v59 = vsel %vm115_vm5, %v114_v27, %v113_v53  ;;  %v654_v37 = vld [vmem:[#allocation5 + $0xb0] sm:$0xff] }
  0x36   :  { %1334 = vmatprep.subr.mxu1 %v364_v21  ;;  %1316 = vmatpush3.msra.mxu0 %v71_v20  ;;  %v65_v57 = vld [vmem:[#allocation2 + $0x2c] sm:$0x1]  ;;  %v120_v58 = vrot.slane %v63_v51, 7  ;;  %v395_v60 = vsel %vm103_vm1, %v394_v43, %v393_v54  ;;  %v66_v61 = vld [vmem:[#allocation2 + $0x30] sm:$0x1]  ;;  %v119_v0 = vsel %vm118_vm6, %v117_v28, %v116_v59  ;;  %v122_v4 = vrot.slane %v64_v56, 6 }
  0x37   :  { %1335 = vmatpush3.msra.mxu1 %v364_v21  ;;  %1317 = vmatprep.subr.mxu0 %v70_v31  ;;  %v67_v62 = vld [vmem:[#allocation2 + $0x34] sm:$0x1]  ;;  %v68_v63 = vld [vmem:[#allocation2 + $0x38] sm:$0x1]  ;;  %v397_v1 = vsel %vm106_vm2, %v396_v44, %v395_v60  ;;  %v69_v2 = vld [vmem:[#allocation2 + $0x3c] sm:$0x1] }
  0x38   :  { %1336 = vmatprep.subr.mxu1 %v363_v32  ;;  %1318 = vmatpush3.msra.mxu0 %v70_v31  ;;  %v121_v3 = vsel %vm100_vm0, %v120_v58, %v62_v45  ;;  %v399_v5 = vsel %vm109_vm3, %v398_v48, %v397_v1  ;;  %v124_v6 = vrot.slane %v65_v57, 5  ;;  %v126_v7 = vrot.slane %v66_v61, 4  ;;  %v354_v9 = vld [vmem:[#allocation2 + $0x21] sm:$0x1]  ;;  %v355_v10 = vld [vmem:[#allocation2 + $0x25] sm:$0x1] }
  0x39   :  { %1337 = vmatpush3.msra.mxu1 %v363_v32  ;;  %1319 = vmatprep.mubr.msk.f32.mxu0 %vm134_vm7, %v119_v0  ;;  %v128_v8 = vrot.slane %v67_v62, 3  ;;  %v401_v11 = vsel %vm112_vm4, %v400_v49, %v399_v5  ;;  %v123_v12 = vsel %vm103_vm1, %v122_v4, %v121_v3  ;;  %v130_v13 = vrot.slane %v68_v63, 2  ;;  %v356_v14 = vld [vmem:[#allocation2 + $0x29] sm:$0x1]  ;;  %v357_v15 = vld [vmem:[#allocation2 + $0x2d] sm:$0x1] }
  0x3a   :  { %1341 = vmatprep.subr.mxu0 %v1521_v46  ;;  %1360 = vmatprep.subr.mxu1 %v1524_v52  ;;  %v403_v16 = vsel %vm115_vm5, %v402_v50, %v401_v11  ;;  %v125_v17 = vsel %vm106_vm2, %v124_v6, %v123_v12  ;;  %v132_v18 = vrot.slane %v69_v2, 1  ;;  %v358_v19 = vld [vmem:[#allocation2 + $0x31] sm:$0x1]  ;;  %v359_v20 = vld [vmem:[#allocation2 + $0x35] sm:$0x1]  ;;  %v406_v25 = vrot.slane %v355_v10, 7 }
  0x3b   :  { %v405_v21 = vsel %vm118_vm6, %v404_v55, %v403_v16  ;;  %v127_v22 = vsel %vm109_vm3, %v126_v7, %v125_v17  ;;  %v360_v23 = vld [vmem:[#allocation2 + $0x39] sm:$0x1]  ;;  %v361_v24 = vld [vmem:[#allocation2 + $0x3d] sm:$0x1]  ;;  %v408_v26 = vrot.slane %v356_v14, 6  ;;  %v410_v28 = vrot.slane %v357_v15, 5 }
  0x3c   :  { %1338 = vmatprep.mubr.msk.f32.mxu1 %vm134_vm7, %v405_v21  ;;  %v129_v27 = vsel %vm112_vm4, %v128_v8, %v127_v22  ;;  %v412_v29 = vrot.slane %v358_v19, 4  ;;  %v407_v31 = vsel %vm100_vm0, %v406_v25, %v354_v9  ;;  %v414_v32 = vrot.slane %v359_v20, 3  ;;  %v653_v38 = vld [vmem:[#allocation5 + $0xa8] sm:$0xff]  ;;  %v631_v40 = vld [vmem:[#allocation2 + $0x2] sm:$0x1]  ;;  %v939_v50 = vld [vmem:[#allocation5 + $0xf0] sm:$0xff] }
  0x3d   :  { %v131_v30 = vsel %vm115_vm5, %v130_v13, %v129_v27  ;;  %v409_v34 = vsel %vm103_vm1, %v408_v26, %v407_v31  ;;  %v416_v35 = vrot.slane %v360_v23, 2  ;;  %v418_v36 = vrot.slane %v361_v24, 1  ;;  %v632_v41 = vld [vmem:[#allocation2 + $0x6] sm:$0x1]  ;;  %v633_v42 = vld [vmem:[#allocation2 + $0xa] sm:$0x1] }
  0x3e   :  { %v133_v33 = vsel %vm118_vm6, %v132_v18, %v131_v30  ;;  %v411_v39 = vsel %vm106_vm2, %v410_v28, %v409_v34  ;;  %v652_v44 = vld [vmem:[#allocation5 + $0xa0] sm:$0xff]  ;;  %v634_v45 = vld [vmem:[#allocation2 + $0xe] sm:$0x1]  ;;  %v635_v47 = vld [vmem:[#allocation2 + $0x12] sm:$0x1]  ;;  %v677_v54 = vrot.slane %v632_v41, 7 }
  0x3f   :  { %1320 = vmatmul.mubr.msk.f32.vlgmr.msra.gmra.mxu0 %vm134_vm7, %v133_v33  ;;  %v413_v43 = vsel %vm109_vm3, %v412_v29, %v411_v39  ;;  %v636_v48 = vld [vmem:[#allocation2 + $0x16] sm:$0x1]  ;;  %v637_v51 = vld [vmem:[#allocation2 + $0x1a] sm:$0x1]  ;;  %v1554_v53 = vld [vmem:[#allocation2 + $0x1e] sm:$0x1] }
  0x40   :  { %1342 = vmatpush3.msra.mxu0 %v1521_v46  ;;  %v415_v49 = vsel %vm112_vm4, %v414_v32, %v413_v43  ;;  %v679_v55 = vrot.slane %v633_v42, 6  ;;  %v651_v57 = vld [vmem:[#allocation5 + $0x98] sm:$0xff]  ;;  %v681_v58 = vrot.slane %v634_v45, 5  ;;  %v683_v59 = vrot.slane %v635_v47, 4  ;;  %v916_v60 = vld [vmem:[#allocation2 + $0x3] sm:$0x1] }
  0x41   :  { %1343 = vmatprep.subr.mxu0 %v654_v37  ;;  %v417_v56 = vsel %vm115_vm5, %v416_v35, %v415_v49  ;;  %v685_v46 = vrot.slane %v636_v48, 3  ;;  %v938_v62 = vld [vmem:[#allocation5 + $0xe8] sm:$0xff]  ;;  %v678_v63 = vsel %vm100_vm0, %v677_v54, %v631_v40  ;;  %v687_v0 = vrot.slane %v637_v51, 2  ;;  %v917_v2 = vld [vmem:[#allocation2 + $0x7] sm:$0x1]  ;;  %v650_v4 = vld [vmem:[#allocation5 + $0x90] sm:$0xff] }
  0x42   :  { %1344 = vmatpush3.msra.mxu0 %v654_v37  ;;  %v419_v61 = vsel %vm118_vm6, %v418_v36, %v417_v56  ;;  %v689_v1 = vrot.slane %v1554_v53, 1  ;;  %v918_v3 = vld [vmem:[#allocation2 + $0xb] sm:$0x1]  ;;  %v680_v5 = vsel %vm103_vm1, %v679_v55, %v678_v63  ;;  %v919_v6 = vld [vmem:[#allocation2 + $0xf] sm:$0x1]  ;;  %v937_v9 = vld [vmem:[#allocation5 + $0xe0] sm:$0xff] }
  0x43   :  { %1345 = vmatprep.subr.mxu0 %v653_v38  ;;  %1339 = vmatmul.mubr.msk.f32.vlgmr.msra.gmra.mxu1 %vm134_vm7, %v419_v61  ;;  %v920_v7 = vld [vmem:[#allocation2 + $0x13] sm:$0x1]  ;;  %v921_v8 = vld [vmem:[#allocation2 + $0x17] sm:$0x1]  ;;  %v682_v10 = vsel %vm106_vm2, %v681_v58, %v680_v5  ;;  %v922_v11 = vld [vmem:[#allocation2 + $0x1b] sm:$0x1] }
  0x44   :  { %1346 = vmatpush3.msra.mxu0 %v653_v38  ;;  %1361 = vmatpush3.msra.mxu1 %v1524_v52  ;;  %v1564_v12 = vld [vmem:[#allocation2 + $0x1f] sm:$0x1]  ;;  %v962_v13 = vrot.slane %v917_v2, 7  ;;  %v964_v14 = vrot.slane %v918_v3, 6  ;;  %v649_v15 = vld [vmem:[#allocation5 + $0x88] sm:$0xff]  ;;  %v684_v16 = vsel %vm109_vm3, %v683_v59, %v682_v10  ;;  %v966_v17 = vrot.slane %v919_v6, 5 }
  0x45   :  { %1347 = vmatprep.subr.mxu0 %v652_v44  ;;  %1362 = vmatprep.subr.mxu1 %v939_v50  ;;  %v968_v18 = vrot.slane %v920_v7, 4  ;;  %v970_v19 = vrot.slane %v921_v8, 3  ;;  %v639_v20 = vld [vmem:[#allocation2 + $0x22] sm:$0x1]  ;;  %v936_v52 = vld [vmem:[#allocation5 + $0xd8] sm:$0xff]  ;;  %v686_v21 = vsel %vm112_vm4, %v685_v46, %v684_v16  ;;  %v972_v23 = vrot.slane %v922_v11, 2 }
  0x46   :  { %1348 = vmatpush3.msra.mxu0 %v652_v44  ;;  %1363 = vmatpush3.msra.mxu1 %v939_v50  ;;  %v963_v22 = vsel %vm100_vm0, %v962_v13, %v916_v60  ;;  %v974_v24 = vrot.slane %v1564_v12, 1  ;;  %v640_v25 = vld [vmem:[#allocation2 + $0x26] sm:$0x1]  ;;  %v641_v26 = vld [vmem:[#allocation2 + $0x2a] sm:$0x1]  ;;  %v935_v31 = vld [vmem:[#allocation5 + $0xd0] sm:$0xff]  ;;  %v688_v32 = vsel %vm115_vm5, %v687_v0, %v686_v21 }
  0x47   :  { %1349 = vmatprep.subr.mxu0 %v651_v57  ;;  %1364 = vmatprep.subr.mxu1 %v938_v62  ;;  %v965_v27 = vsel %vm103_vm1, %v964_v14, %v963_v22  ;;  %v642_v28 = vld [vmem:[#allocation2 + $0x2e] sm:$0x1]  ;;  %v643_v29 = vld [vmem:[#allocation2 + $0x32] sm:$0x1]  ;;  %v644_v30 = vld [vmem:[#allocation2 + $0x36] sm:$0x1]  ;;  %v690_v51 = vsel %vm118_vm6, %v689_v1, %v688_v32 }
  0x48   :  { %1350 = vmatpush3.msra.mxu0 %v651_v57  ;;  %1365 = vmatpush3.msra.mxu1 %v938_v62  ;;  %v967_v33 = vsel %vm106_vm2, %v966_v17, %v965_v27  ;;  %v645_v34 = vld [vmem:[#allocation2 + $0x3a] sm:$0x1]  ;;  %v646_v35 = vld [vmem:[#allocation2 + $0x3e] sm:$0x1]  ;;  %v691_v36 = vrot.slane %v640_v25, 7  ;;  %v693_v37 = vrot.slane %v641_v26, 6 }
  0x49   :  { %1351 = vmatprep.subr.mxu0 %v650_v4  ;;  %1366 = vmatprep.subr.mxu1 %v937_v9  ;;  %v648_v38 = vld [vmem:[#allocation5 + $0x80] sm:$0xff]  ;;  %v969_v39 = vsel %vm109_vm3, %v968_v18, %v967_v33  ;;  %v695_v40 = vrot.slane %v642_v28, 5  ;;  %v697_v41 = vrot.slane %v643_v29, 4  ;;  %v699_v42 = vrot.slane %v644_v30, 3  ;;  %v926_v50 = vld [vmem:[#allocation2 + $0x2b] sm:$0x1] }
  0x4a   :  { %1352 = vmatpush3.msra.mxu0 %v650_v4  ;;  %v924_v43 = vld [vmem:[#allocation2 + $0x23] sm:$0x1]  ;;  %1367 = vmatpush3.msra.mxu1 %v937_v9  ;;  %v971_v44 = vsel %vm112_vm4, %v970_v19, %v969_v39  ;;  %v692_v45 = vsel %vm100_vm0, %v691_v36, %v639_v20  ;;  %v701_v47 = vrot.slane %v645_v34, 2  ;;  %v703_v48 = vrot.slane %v646_v35, 1  ;;  %v925_v49 = vld [vmem:[#allocation2 + $0x27] sm:$0x1] }
  0x4b   :  { %1353 = vmatprep.subr.mxu0 %v649_v15  ;;  %1368 = vmatprep.subr.mxu1 %v936_v52  ;;  %v973_v54 = vsel %vm115_vm5, %v972_v23, %v971_v44  ;;  %v694_v55 = vsel %vm103_vm1, %v693_v37, %v692_v45  ;;  %v927_v56 = vld [vmem:[#allocation2 + $0x2f] sm:$0x1]  ;;  %v928_v57 = vld [vmem:[#allocation2 + $0x33] sm:$0x1]  ;;  %v929_v58 = vld [vmem:[#allocation2 + $0x37] sm:$0x1]  ;;  %v220_v19 = vlaneseq }
  0x4c   :  { %1354 = vmatpush3.msra.mxu0 %v649_v15  ;;  %1369 = vmatpush3.msra.mxu1 %v936_v52  ;;  %v934_v59 = vld [vmem:[#allocation5 + $0xc8] sm:$0xff]  ;;  %v975_v46 = vsel %vm118_vm6, %v974_v24, %v973_v54  ;;  %v696_v60 = vsel %vm106_vm2, %v695_v40, %v694_v55  ;;  %v930_v61 = vld [vmem:[#allocation2 + $0x3b] sm:$0x1]  ;;  %v976_v62 = vrot.slane %v925_v49, 7  ;;  %v978_v63 = vrot.slane %v926_v50, 6  ;;  %v933_v3 = vld [vmem:[#allocation5 + $0xc0] sm:$0xff] }
  0x4d   :  { %1355 = vmatprep.subr.mxu0 %v648_v38  ;;  %1370 = vmatprep.subr.mxu1 %v935_v31  ;;  %v698_v53 = vsel %vm109_vm3, %v697_v41, %v696_v60  ;;  %v931_v0 = vld [vmem:[#allocation2 + $0x3f] sm:$0x1]  ;;  %v980_v1 = vrot.slane %v927_v56, 5  ;;  %v982_v2 = vrot.slane %v928_v57, 4  ;;  %v984_v6 = vrot.slane %v929_v58, 3  ;;  %s1206_s2 = sshll.u32 %s1482_s0, 4  ;;  %s1207_s2 = int_to_ptr.vmem [resolvable:$true] %s1206_s2 }
  0x4e   :  { %1356 = vmatpush3.msra.mxu0 %v648_v38  ;;  %1371 = vmatpush3.msra.mxu1 %v935_v31  ;;  %v700_v4 = vsel %vm112_vm4, %v699_v42, %v698_v53  ;;  %v977_v5 = vsel %vm100_vm0, %v976_v62, %v924_v43  ;;  %v986_v9 = vrot.slane %v930_v61, 2  ;;  %v988_v12 = vrot.slane %v931_v0, 1  ;;  %v1219_v21 = vld [vmem:[#allocation7] ss:$0 sm:$0xff]  ;;  %v1230_v28 = vld [vmem:[#allocation7 + $0x1] ss:$0 sm:$0xff]  ;;  %p1453_p2 = scmp.lt.s32.totalorder %s1207_s2, %s1207_s2 }
  0x4f   :  { %1357 = vmatprep.mubr.msk.f32.mxu0 %vm134_vm7, %v690_v51  ;;  %1372 = vmatprep.subr.mxu1 %v934_v59  ;;  %v702_v7 = vsel %vm115_vm5, %v701_v47, %v700_v4  ;;  %v979_v8 = vsel %vm103_vm1, %v978_v63, %v977_v5  ;;  %v1481_v17 = vmov 1966171168   ;;  %v221_v52 = vshrl.u32 %v220_v19, 7  ;;  %s1448_s30 = scalar_lea.vmem %s1207_s2, 1024 }
  0x50   :  { %1376 = vmatprep.mubr.msk.f32.mxu1 %vm134_vm7, %v975_v46  ;;  %1373 = vmatpush3.msra.mxu1 %v934_v59  ;;  %v704_v10 = vsel %vm118_vm6, %v703_v48, %v702_v7  ;;  %v981_v11 = vsel %vm106_vm2, %v980_v1, %v979_v8  ;;  %v218_v18 = vunpack.c.l.s4 %v1481_v17  ;;  %p1449_p1 = scmp.ne.s32.totalorder %s1207_s2, %s1448_s30  ;;  %p1454_p3 = scmp.lt.s32.totalorder %s1448_s30, %s1448_s30 }
  0x51   :  { %1374 = vmatprep.subr.mxu1 %v933_v3  ;;  %1358 = vmatmul.mubr.msk.f32.vlgmr.msra.gmra.mxu0 %vm134_vm7, %v704_v10  ;;  %v983_v13 = vsel %vm109_vm3, %v982_v2, %v981_v11 }
  0x52   :  { %1375 = vmatpush3.msra.mxu1 %v933_v3  ;;  %v985_v14 = vsel %vm112_vm4, %v984_v6, %v983_v13  ;;  %v219_v20 = vunpack.c.0.s8 %v218_v18  ;;  %v1241_v13 = vld [vmem:[#allocation7 + $0x2] ss:$0 sm:$0xff]  ;;  %p1455_p4 = por %p1454_p3, %p1453_p2 }
  0x53   :  { %v987_v15 = vsel %vm115_vm5, %v986_v9, %v985_v14 }
  0x54   :  { %v989_v16 = vsel %vm118_vm6, %v988_v12, %v987_v15  ;;  %v1598_v22 = vsub.s32 %v219_v20, %v221_v52  ;;  %p1456_p5 = pnand %p1455_p4, %p1449_p1 }
  0x55   :  { %1377 = vmatmul.mubr.msk.f32.vlgmr.msra.gmra.mxu1 %vm134_vm7, %v989_v16 }
  0xff   :  { %v1321_v23 = vpop.f32.mrf.mxu0 }
 0x100   :  { %v211_v24 = vadd.f32 %v1321_v23, %v1219_v21  ;;  %v1252_v23 = vld [vmem:[#allocation7 + $0x3] ss:$0 sm:$0xff] }
 0x101   :  { %v205_v25 = vpop.f32.mrf.mxu0 }
 0x102   :  { %v265_v26 = vcombine.high %v211_v24, %v211_v24  ;;  %v272_v27 = vrot.slane %v211_v24, %v1598_v22  ;;  %v206_v29 = vadd.f32 %v1219_v21, %v205_v25 }
 0x103   :  { %v1340_v33 = vpop.f32.mrf.mxu1 }
 0x104   :  { %v279_v30 = vrot.slane %v265_v26, %v1598_v22  ;;  %v280_v31 = vcombine.high %v272_v27, %v272_v27  ;;  %v288_v32 = vrot.slane %v272_v27, %v1598_v22  ;;  %1226 = vst.sshfl [vmem:[#allocation8 + $0x20] sm:$0x1 pattern:$0x73625140] %v272_v27  ;;  %v216_v34 = vcombine.high %v206_v29, %v206_v29 }
 0x105   :  { %v496_v35 = vadd.f32 %v1340_v33, %v1230_v28  ;;  %v223_v36 = vrot.slane %v206_v29, %v1598_v22  ;;  %v490_v56 = vpop.f32.mrf.mxu1 }
 0x106   :  { %v281_v37 = vcombine.high %v279_v30, %v279_v30  ;;  %v295_v38 = vrot.slane %v279_v30, %v1598_v22  ;;  %v302_v39 = vrot.slane %v280_v31, %v1598_v22  ;;  %v310_v40 = vcombine.high %v288_v32, %v288_v32  ;;  %1227 = vst.sshfl [vmem:[#allocation8 + $0x24] sm:$0x1 pattern:$0x73625140] %v280_v31 }
 0x107   :  { %1228 = vst.sshfl [vmem:[#allocation8 + $0x30] sm:$0x1 pattern:$0x73625140] %v279_v30  ;;  %v550_v41 = vcombine.high %v496_v35, %v496_v35  ;;  %v557_v42 = vrot.slane %v496_v35, %v1598_v22  ;;  %v230_v43 = vrot.slane %v216_v34, %v1598_v22  ;;  %v231_v44 = vcombine.high %v223_v36, %v223_v36 }
 0x108   :  { %1222 = vst.sshfl [vmem:[#allocation8] sm:$0x1 pattern:$0x73625140] %v223_v36  ;;  %v309_v45 = vrot.slane %v281_v37, %v1598_v22  ;;  %v311_v47 = vcombine.high %v295_v38, %v295_v38  ;;  %v312_v48 = vcombine.high %v302_v39, %v302_v39  ;;  %340 = vst [vmem:[#allocation8 + $0x28] sm:$0x1] %v310_v40 }
 0x109   :  { %1229 = vst.sshfl [vmem:[#allocation8 + $0x34] sm:$0x1 pattern:$0x73625140] %v281_v37  ;;  %v239_v49 = vrot.slane %v223_v36, %v1598_v22  ;;  %v564_v50 = vrot.slane %v550_v41, %v1598_v22  ;;  %v565_v51 = vcombine.high %v557_v42, %v557_v42  ;;  %v573_v54 = vrot.slane %v557_v42, %v1598_v22 }
 0x10a   :  { %1237 = vst.sshfl [vmem:[#allocation8 + $0x21] sm:$0x1 pattern:$0x73625140] %v557_v42  ;;  %v232_v55 = vcombine.high %v230_v43, %v230_v43  ;;  %v313_v57 = vcombine.high %v309_v45, %v309_v45  ;;  %341 = vst [vmem:[#allocation8 + $0x2c] sm:$0x1] %v312_v48  ;;  %v246_v58 = vrot.slane %v230_v43, %v1598_v22 }
 0x10b   :  { %1223 = vst.sshfl [vmem:[#allocation8 + $0x4] sm:$0x1 pattern:$0x73625140] %v231_v44  ;;  %344 = vst [vmem:[#allocation8 + $0x38] sm:$0x1] %v311_v47  ;;  %v253_v59 = vrot.slane %v231_v44, %v1598_v22  ;;  %v261_v46 = vcombine.high %v239_v49, %v239_v49  ;;  %v566_v60 = vcombine.high %v564_v50, %v564_v50 }
 0x10c   :  { %1224 = vst.sshfl [vmem:[#allocation8 + $0x10] sm:$0x1 pattern:$0x73625140] %v230_v43  ;;  %v580_v61 = vrot.slane %v564_v50, %v1598_v22  ;;  %v587_v62 = vrot.slane %v565_v51, %v1598_v22  ;;  %v595_v63 = vcombine.high %v573_v54, %v573_v54  ;;  %345 = vst [vmem:[#allocation8 + $0x3c] sm:$0x1] %v313_v57 }
 0x10d   :  { %1238 = vst.sshfl [vmem:[#allocation8 + $0x25] sm:$0x1 pattern:$0x73625140] %v565_v51  ;;  %v260_v53 = vrot.slane %v232_v55, %v1598_v22  ;;  %v262_v0 = vcombine.high %v246_v58, %v246_v58  ;;  %v263_v1 = vcombine.high %v253_v59, %v253_v59  ;;  %332 = vst [vmem:[#allocation8 + $0x8] sm:$0x1] %v261_v46 }
 0x10e   :  { %1239 = vst.sshfl [vmem:[#allocation8 + $0x31] sm:$0x1 pattern:$0x73625140] %v564_v50  ;;  %v491_v2 = vadd.f32 %v1230_v28, %v490_v56  ;;  %v594_v3 = vrot.slane %v566_v60, %v1598_v22  ;;  %v596_v4 = vcombine.high %v580_v61, %v580_v61  ;;  %v597_v5 = vcombine.high %v587_v62, %v587_v62 }
 0x10f   :  { %1225 = vst.sshfl [vmem:[#allocation8 + $0x14] sm:$0x1 pattern:$0x73625140] %v232_v55  ;;  %625 = vst [vmem:[#allocation8 + $0x29] sm:$0x1] %v595_v63  ;;  %v264_v6 = vcombine.high %v260_v53, %v260_v53 }
 0x110   :  { %1240 = vst.sshfl [vmem:[#allocation8 + $0x35] sm:$0x1 pattern:$0x73625140] %v566_v60  ;;  %333 = vst [vmem:[#allocation8 + $0xc] sm:$0x1] %v263_v1  ;;  %v501_v7 = vcombine.high %v491_v2, %v491_v2  ;;  %v508_v8 = vrot.slane %v491_v2, %v1598_v22  ;;  %v598_v9 = vcombine.high %v594_v3, %v594_v3 }
 0x111   :  { %336 = vst [vmem:[#allocation8 + $0x18] sm:$0x1] %v262_v0  ;;  %626 = vst [vmem:[#allocation8 + $0x2d] sm:$0x1] %v597_v5  ;;  %v1359_v18 = vpop.f32.mrf.mxu0 }
 0x112   :  { %629 = vst [vmem:[#allocation8 + $0x39] sm:$0x1] %v596_v4  ;;  %337 = vst [vmem:[#allocation8 + $0x1c] sm:$0x1] %v264_v6  ;;  %v515_v10 = vrot.slane %v501_v7, %v1598_v22  ;;  %v516_v11 = vcombine.high %v508_v8, %v508_v8  ;;  %v524_v12 = vrot.slane %v508_v8, %v1598_v22 }
 0x113   :  { %1233 = vst.sshfl [vmem:[#allocation8 + $0x1] sm:$0x1 pattern:$0x73625140] %v508_v8  ;;  %630 = vst [vmem:[#allocation8 + $0x3d] sm:$0x1] %v598_v9  ;;  %v781_v19 = vadd.f32 %v1359_v18, %v1241_v13  ;;  %v775_v24 = vpop.f32.mrf.mxu0 }
 0x114   :  { %v517_v14 = vcombine.high %v515_v10, %v515_v10  ;;  %v531_v15 = vrot.slane %v515_v10, %v1598_v22  ;;  %v538_v16 = vrot.slane %v516_v11, %v1598_v22  ;;  %v546_v17 = vcombine.high %v524_v12, %v524_v12  ;;  %1234 = vst.sshfl [vmem:[#allocation8 + $0x5] sm:$0x1 pattern:$0x73625140] %v516_v11 }
 0x115   :  { %1235 = vst.sshfl [vmem:[#allocation8 + $0x11] sm:$0x1 pattern:$0x73625140] %v515_v10  ;;  %v835_v25 = vcombine.high %v781_v19, %v781_v19  ;;  %v842_v26 = vrot.slane %v781_v19, %v1598_v22  ;;  %v776_v27 = vadd.f32 %v1241_v13, %v775_v24  ;;  %v1378_v29 = vpop.f32.mrf.mxu1 }
 0x116   :  { %v545_v20 = vrot.slane %v517_v14, %v1598_v22  ;;  %v547_v52 = vcombine.high %v531_v15, %v531_v15  ;;  %v548_v21 = vcombine.high %v538_v16, %v538_v16  ;;  %617 = vst [vmem:[#allocation8 + $0x9] sm:$0x1] %v546_v17  ;;  %1236 = vst.sshfl [vmem:[#allocation8 + $0x15] sm:$0x1 pattern:$0x73625140] %v517_v14 }
 0x117   :  { %v849_v30 = vrot.slane %v835_v25, %v1598_v22  ;;  %v850_v31 = vcombine.high %v842_v26, %v842_v26  ;;  %v858_v32 = vrot.slane %v842_v26, %v1598_v22  ;;  %1248 = vst.sshfl [vmem:[#allocation8 + $0x22] sm:$0x1 pattern:$0x73625140] %v842_v26  ;;  %v1066_v33 = vadd.f32 %v1378_v29, %v1252_v23  ;;  %v1060_v55 = vpop.f32.mrf.mxu1 }
 0x118   :  { %v549_v28 = vcombine.high %v545_v20, %v545_v20  ;;  %618 = vst [vmem:[#allocation8 + $0xd] sm:$0x1] %v548_v21  ;;  %621 = vst [vmem:[#allocation8 + $0x19] sm:$0x1] %v547_v52  ;;  %v786_v34 = vcombine.high %v776_v27, %v776_v27  ;;  %v793_v35 = vrot.slane %v776_v27, %v1598_v22 }
 0x119   :  { %v851_v36 = vcombine.high %v849_v30, %v849_v30  ;;  %v865_v37 = vrot.slane %v849_v30, %v1598_v22  ;;  %v872_v38 = vrot.slane %v850_v31, %v1598_v22  ;;  %v880_v39 = vcombine.high %v858_v32, %v858_v32  ;;  %1249 = vst.sshfl [vmem:[#allocation8 + $0x26] sm:$0x1 pattern:$0x73625140] %v850_v31 }
 0x11a   :  { %622 = vst [vmem:[#allocation8 + $0x1d] sm:$0x1] %v549_v28  ;;  %1250 = vst.sshfl [vmem:[#allocation8 + $0x32] sm:$0x1 pattern:$0x73625140] %v849_v30  ;;  %v1120_v40 = vcombine.high %v1066_v33, %v1066_v33  ;;  %v1127_v41 = vrot.slane %v1066_v33, %v1598_v22  ;;  %v800_v42 = vrot.slane %v786_v34, %v1598_v22 }
 0x11b   :  { %v801_v43 = vcombine.high %v793_v35, %v793_v35  ;;  %1244 = vst.sshfl [vmem:[#allocation8 + $0x2] sm:$0x1 pattern:$0x73625140] %v793_v35  ;;  %v879_v44 = vrot.slane %v851_v36, %v1598_v22  ;;  %v881_v45 = vcombine.high %v865_v37, %v865_v37  ;;  %v882_v47 = vcombine.high %v872_v38, %v872_v38 }
 0x11c   :  { %910 = vst [vmem:[#allocation8 + $0x2a] sm:$0x1] %v880_v39  ;;  %1251 = vst.sshfl [vmem:[#allocation8 + $0x36] sm:$0x1 pattern:$0x73625140] %v851_v36  ;;  %v809_v48 = vrot.slane %v793_v35, %v1598_v22  ;;  %v1134_v49 = vrot.slane %v1120_v40, %v1598_v22  ;;  %v1135_v50 = vcombine.high %v1127_v41, %v1127_v41 }
 0x11d   :  { %v1143_v51 = vrot.slane %v1127_v41, %v1598_v22  ;;  %1259 = vst.sshfl [vmem:[#allocation8 + $0x23] sm:$0x1 pattern:$0x73625140] %v1127_v41  ;;  %v802_v54 = vcombine.high %v800_v42, %v800_v42  ;;  %v883_v56 = vcombine.high %v879_v44, %v879_v44  ;;  %911 = vst [vmem:[#allocation8 + $0x2e] sm:$0x1] %v882_v47 }
 0x11e   :  { %1245 = vst.sshfl [vmem:[#allocation8 + $0x6] sm:$0x1 pattern:$0x73625140] %v801_v43  ;;  %914 = vst [vmem:[#allocation8 + $0x3a] sm:$0x1] %v881_v45  ;;  %v816_v57 = vrot.slane %v800_v42, %v1598_v22  ;;  %v823_v58 = vrot.slane %v801_v43, %v1598_v22  ;;  %v831_v59 = vcombine.high %v809_v48, %v809_v48 }
 0x11f   :  { %1246 = vst.sshfl [vmem:[#allocation8 + $0x12] sm:$0x1 pattern:$0x73625140] %v800_v42  ;;  %v1136_v46 = vcombine.high %v1134_v49, %v1134_v49  ;;  %v1150_v60 = vrot.slane %v1134_v49, %v1598_v22  ;;  %v1157_v61 = vrot.slane %v1135_v50, %v1598_v22  ;;  %v1165_v62 = vcombine.high %v1143_v51, %v1143_v51 }
 0x120   :  { %1260 = vst.sshfl [vmem:[#allocation8 + $0x27] sm:$0x1 pattern:$0x73625140] %v1135_v50  ;;  %915 = vst [vmem:[#allocation8 + $0x3e] sm:$0x1] %v883_v56  ;;  %v830_v63 = vrot.slane %v802_v54, %v1598_v22  ;;  %v832_v53 = vcombine.high %v816_v57, %v816_v57  ;;  %v833_v0 = vcombine.high %v823_v58, %v823_v58 }
 0x121   :  { %1261 = vst.sshfl [vmem:[#allocation8 + $0x33] sm:$0x1 pattern:$0x73625140] %v1134_v49  ;;  %902 = vst [vmem:[#allocation8 + $0xa] sm:$0x1] %v831_v59  ;;  %v1061_v1 = vadd.f32 %v1252_v23, %v1060_v55  ;;  %v1164_v2 = vrot.slane %v1136_v46, %v1598_v22  ;;  %v1166_v3 = vcombine.high %v1150_v60, %v1150_v60 }
 0x122   :  { %1247 = vst.sshfl [vmem:[#allocation8 + $0x16] sm:$0x1 pattern:$0x73625140] %v802_v54  ;;  %v1167_v4 = vcombine.high %v1157_v61, %v1157_v61  ;;  %1195 = vst [vmem:[#allocation8 + $0x2b] sm:$0x1] %v1165_v62  ;;  %v834_v5 = vcombine.high %v830_v63, %v830_v63 }
 0x123   :  { %1262 = vst.sshfl [vmem:[#allocation8 + $0x37] sm:$0x1 pattern:$0x73625140] %v1136_v46  ;;  %903 = vst [vmem:[#allocation8 + $0xe] sm:$0x1] %v833_v0  ;;  %v1071_v6 = vcombine.high %v1061_v1, %v1061_v1  ;;  %v1078_v7 = vrot.slane %v1061_v1, %v1598_v22  ;;  %v1168_v8 = vcombine.high %v1164_v2, %v1164_v2 }
 0x124   :  { %906 = vst [vmem:[#allocation8 + $0x1a] sm:$0x1] %v832_v53  ;;  %1196 = vst [vmem:[#allocation8 + $0x2f] sm:$0x1] %v1167_v4 }
 0x125   :  { %1199 = vst [vmem:[#allocation8 + $0x3b] sm:$0x1] %v1166_v3  ;;  %907 = vst [vmem:[#allocation8 + $0x1e] sm:$0x1] %v834_v5  ;;  %v1085_v9 = vrot.slane %v1071_v6, %v1598_v22  ;;  %v1086_v10 = vcombine.high %v1078_v7, %v1078_v7  ;;  %v1094_v11 = vrot.slane %v1078_v7, %v1598_v22 }
 0x126   :  { %1255 = vst.sshfl [vmem:[#allocation8 + $0x3] sm:$0x1 pattern:$0x73625140] %v1078_v7  ;;  %1200 = vst [vmem:[#allocation8 + $0x3f] sm:$0x1] %v1168_v8 }
 0x127   :  { %v1087_v12 = vcombine.high %v1085_v9, %v1085_v9  ;;  %v1101_v13 = vrot.slane %v1085_v9, %v1598_v22  ;;  %v1108_v14 = vrot.slane %v1086_v10, %v1598_v22  ;;  %v1116_v15 = vcombine.high %v1094_v11, %v1094_v11  ;;  %1256 = vst.sshfl [vmem:[#allocation8 + $0x7] sm:$0x1 pattern:$0x73625140] %v1086_v10 }
 0x128   :  { %1257 = vst.sshfl [vmem:[#allocation8 + $0x13] sm:$0x1 pattern:$0x73625140] %v1085_v9 }
 0x129   :  { %v1115_v16 = vrot.slane %v1087_v12, %v1598_v22  ;;  %v1117_v17 = vcombine.high %v1101_v13, %v1101_v13  ;;  %v1118_v18 = vcombine.high %v1108_v14, %v1108_v14  ;;  %1187 = vst [vmem:[#allocation8 + $0xb] sm:$0x1] %v1116_v15  ;;  %1258 = vst.sshfl [vmem:[#allocation8 + $0x17] sm:$0x1 pattern:$0x73625140] %v1087_v12 }
 0x12b   :  { %v1119_v19 = vcombine.high %v1115_v16, %v1115_v16  ;;  %1188 = vst [vmem:[#allocation8 + $0xf] sm:$0x1] %v1118_v18  ;;  %1191 = vst [vmem:[#allocation8 + $0x1b] sm:$0x1] %v1117_v17 }
 0x12d   :  { %1192 = vst [vmem:[#allocation8 + $0x1f] sm:$0x1] %v1119_v19 }
 0x12e   :  { %1459 = shalt.err (!%p1456_p5)
}
 0x12f   :  { %1212 = dma.vmem_to_hbm [thread:$0]  %s1207_s2, 1024, %s1657_s3, [#allocation4], %s1478_s22, %s1478_s22, %s1479_s23  }
 0x130   :  { %1472 = dma.done.wait [#allocation4], 1024  }
 0x131   :  { %1473 = vsyncadd [#allocation4], 4294966272 }
 0x132   :  { %1216 = vsyncpa [#allocation3], 1 }
 0x133   :  { %1217 = vsyncpa [#allocation6], 1 }
 0x134   :  { %1218 = vsyncpa [#allocation4], 1 }

</bundles_post_ra>
